<compile_context>
chip_gen: v5e
topology: v5e:2x2
jax: 0.10.0
libtpu: 0.0.40
codegen_flags: <defaults>
</compile_context>

<pallas_src>
import jax
import jax.numpy as jnp
import numpy as np
from jax.experimental import pallas as pl
from jax.experimental.pallas import tpu as pltpu


def decoder_kernel(emb_ref, hid_ref, enc_ref, mask_ref,
                   wa_h_ref, wa_e_ref, ba_ref, v_ref,
                   w_ih_ref, bih_ref, whh_ref, bhh_ref,
                   w_o_ref, bo_ref,
                   out_ref, hnew_ref, a_ref):
    B, S, H = enc_ref.shape
    cdt = wa_h_ref.dtype            # MXU input dtype (f32 or bf16); accumulation is f32

    emb = emb_ref[...]              # [B, E]   f32
    hid = hid_ref[...]              # [B, H]   f32
    enc = enc_ref[...]              # [B, S, H] f32
    mask = mask_ref[...]            # [B, S]   f32 (0/1)

    # ---- attention: scores[b,s] = v . tanh(Wh h_b + We enc_{b,s} + ba) ----
    hp = jnp.dot(hid.astype(cdt), wa_h_ref[...],
                 preferred_element_type=jnp.float32) + ba_ref[...]       # [B, H]
    ep = jnp.dot(enc.reshape(B * S, H).astype(cdt), wa_e_ref[...],
                 preferred_element_type=jnp.float32).reshape(B, S, H)    # [B, S, H]
    energy = jnp.tanh(ep + hp[:, None, :])                               # [B, S, H]
    # N=1 matmul replaced by VPU multiply + XLU lane reduce (keeps MXU slot free)
    scores = jnp.sum(energy * v_ref[...][None, :, :], axis=-1)           # [B, S]

    # fused masked softmax over S (== softmax -> *mask -> renorm for 0/1 masks)
    scores = scores + jnp.where(mask > 0.0, jnp.float32(0.0), jnp.float32(-1e30))
    m = jnp.max(scores, axis=-1, keepdims=True)
    e = jnp.exp(scores - m)
    a = e * pl.reciprocal(jnp.sum(e, axis=-1, keepdims=True), approx=True)  # [B, S]
    a_ref[...] = a                                                       # single lane-dense store

    # context vector: weighted[b,:] = sum_s a[b,s] * enc[b,s,:]
    weighted = jnp.sum(a[:, :, None] * enc, axis=1)                      # [B, H]

    # ---- GRU step: x = [embedded | weighted], one fused GEMM per operand ----
    x = jnp.concatenate([emb, weighted], axis=1)                         # [B, E+H]
    gi = jnp.dot(x.astype(cdt), w_ih_ref[...],
                 preferred_element_type=jnp.float32) + bih_ref[...]      # [B, 3H]
    gh = jnp.dot(hid.astype(cdt), whh_ref[...],
                 preferred_element_type=jnp.float32) + bhh_ref[...]      # [B, 3H]
    r = jax.nn.sigmoid(gi[:, 0:H] + gh[:, 0:H])
    z = jax.nn.sigmoid(gi[:, H:2 * H] + gh[:, H:2 * H])
    n = jnp.tanh(gi[:, 2 * H:3 * H] + r * gh[:, 2 * H:3 * H])
    h_new = (1.0 - z) * n + z * hid                                      # [B, H]
    hnew_ref[...] = h_new

    # ---- output projection on [h_new | weighted | embedded] (V padded to lane width) ----
    y = jnp.concatenate([h_new, weighted, emb], axis=1)                  # [B, 2H+E]
    out_ref[...] = (jnp.dot(y.astype(cdt), w_o_ref[...],
                            preferred_element_type=jnp.float32) + bo_ref[...])


def decoder_forward(params, input_ids, hidden, encoder_outputs, mask,
                    weight_dtype=jnp.float32, batch_major_enc=False):
    """input_ids [B] int32, hidden [B,H], encoder_outputs [S,B,H] (or [B,S,H] if
    batch_major_enc=True), mask [B,S]. Returns (output [B,V], hidden [B,H], a [B,S])."""
    f32 = jnp.float32

    def cast(x, dt):                       # avoid redundant HBM-rewriting casts
        return x if x.dtype == dt else x.astype(dt)

    embedded = params["embedding"][input_ids]                    # [B, E]; dropout == identity
    enc = encoder_outputs if batch_major_enc else jnp.transpose(encoder_outputs, (1, 0, 2))
    B, S, H = enc.shape
    V = params["wo_h"].shape[1]
    V_pad = ((V + 127) // 128) * 128                             # lane-dense output store

    # one-time weight packing: fused-K GEMMs + vocab padding (cheap, wrapper side)
    w_ih = jnp.concatenate([params["wih_e"], params["wih_w"]], axis=0)               # [E+H, 3H]
    w_o = jnp.concatenate([params["wo_h"], params["wo_w"], params["wo_e"]], axis=0)  # [2H+E, V]
    w_o = jnp.pad(w_o, ((0, 0), (0, V_pad - V)))
    bo = jnp.pad(params["bo"], ((0, 0), (0, V_pad - V)))

    inputs = (cast(embedded, f32), cast(hidden, f32), cast(enc, f32), cast(mask, f32),
              cast(params["wa_h"], weight_dtype), cast(params["wa_e"], weight_dtype),
              cast(params["ba"], f32), cast(params["v"].reshape(1, H), f32),
              cast(w_ih, weight_dtype), cast(params["bih"], f32),
              cast(params["whh"], weight_dtype), cast(params["bhh"], f32),
              cast(w_o, weight_dtype), cast(bo, f32))

    vmem = pl.BlockSpec(memory_space=pltpu.MemorySpace.VMEM)
    out_p, h_new, a = pl.pallas_call(
        decoder_kernel,
        out_shape=(jax.ShapeDtypeStruct((B, V_pad), jnp.float32),
                   jax.ShapeDtypeStruct((B, H), jnp.float32),
                   jax.ShapeDtypeStruct((B, S), jnp.float32)),
        in_specs=[vmem] * len(inputs),
        out_specs=(vmem, vmem, vmem),
    )(*inputs)

    return out_p[:, :V], h_new, a


def decoder_ref(params, input_ids, hidden, encoder_outputs, mask):
    """Pure-JAX reference mirroring the PyTorch forward (eval mode)."""
    embedded = params["embedding"][input_ids]                  # [B, E]
    enc = jnp.transpose(encoder_outputs, (1, 0, 2))            # [B, S, H]
    H = hidden.shape[1]

    hp = hidden @ params["wa_h"]                               # [B, H]
    ep = jnp.einsum("bsh,hk->bsk", enc, params["wa_e"])        # [B, S, H]
    energy = jnp.tanh(ep + hp[:, None, :] + params["ba"])      # [B, S, H]
    scores = jnp.einsum("bsh,ho->bs", energy, params["v"])     # [B, S]
    a = jax.nn.softmax(scores, axis=1)
    a = a * mask
    a = a / jnp.sum(a, axis=1, keepdims=True)
    weighted = jnp.einsum("bs,bsh->bh", a, enc)                # [B, H]

    gi = embedded @ params["wih_e"] + weighted @ params["wih_w"] + params["bih"][0]
    gh = hidden @ params["whh"] + params["bhh"][0]
    r = jax.nn.sigmoid(gi[:, :H] + gh[:, :H])
    z = jax.nn.sigmoid(gi[:, H:2 * H] + gh[:, H:2 * H])
    n = jnp.tanh(gi[:, 2 * H:] + r * gh[:, 2 * H:])
    h_new = (1.0 - z) * n + z * hidden

    out = (h_new @ params["wo_h"] + weighted @ params["wo_w"]
           + embedded @ params["wo_e"] + params["bo"][0])
    return out, h_new, a


def init_params(key, output_dim, emb_dim, hid_dim):
    ks = jax.random.split(key, 16)

    def u(k, shape, scale):
        return jax.random.uniform(k, shape, jnp.float32, -1.0, 1.0) * scale

    H, E, V = hid_dim, emb_dim, output_dim
    s_attn = 1.0 / np.sqrt(2 * H)
    s_gru = 1.0 / np.sqrt(H)
    s_out = 1.0 / np.sqrt(2 * H + E)
    return {
        "embedding": u(ks[0], (V, E), 1.0),
        # attention: Linear(2H -> H) split into hidden / encoder halves (pre-transposed), plus v
        "wa_h": u(ks[1], (H, H), s_attn),
        "wa_e": u(ks[2], (H, H), s_attn),
        "ba": u(ks[3], (1, H), s_attn),
        "v": u(ks[4], (H, 1), 1.0 / np.sqrt(H)),
        # GRU: weight_ih [3H, E+H] split by input cat order (embedded | weighted), pre-transposed
        "wih_e": u(ks[5], (E, 3 * H), s_gru),
        "wih_w": u(ks[6], (H, 3 * H), s_gru),
        "bih": u(ks[7], (1, 3 * H), s_gru),
        "whh": u(ks[8], (H, 3 * H), s_gru),
        "bhh": u(ks[9], (1, 3 * H), s_gru),
        # out: Linear(2H+E -> V) split by cat order (output | weighted | embedded), pre-transposed
        "wo_h": u(ks[10], (H, V), s_out),
        "wo_w": u(ks[11], (H, V), s_out),
        "wo_e": u(ks[12], (E, V), s_out),
        "bo": u(ks[13], (1, V), s_out),
    }


if __name__ == "__main__":
    # small shapes consistent with the module
    B, S = 2, 8
    output_dim, emb_dim, hid_dim = 40, 16, 32

    key = jax.random.PRNGKey(0)
    k_par, k_in, k_hid, k_enc = jax.random.split(key, 4)

    params = init_params(k_par, output_dim, emb_dim, hid_dim)

    input_ids = jax.random.randint(k_in, (B,), 0, output_dim, dtype=jnp.int32)
    hidden = jax.random.normal(k_hid, (B, hid_dim), jnp.float32)
    encoder_outputs = jax.random.normal(k_enc, (S, B, hid_dim), jnp.float32)
    # mask with some padded positions in the second sequence
    mask = jnp.ones((B, S), jnp.float32).at[1, 6:].set(0.0)

    # f32 path (default)
    out, h_new, a = decoder_forward(params, input_ids, hidden, encoder_outputs, mask)
    jax.block_until_ready((out, h_new, a))

    ro, rh, ra = decoder_ref(params, input_ids, hidden, encoder_outputs, mask)
    np.testing.assert_allclose(np.asarray(out), np.asarray(ro), rtol=5e-3, atol=5e-3)
    np.testing.assert_allclose(np.asarray(h_new), np.asarray(rh), rtol=5e-3, atol=5e-3)
    np.testing.assert_allclose(np.asarray(a), np.asarray(ra), rtol=5e-3, atol=5e-3)
    assert out.shape == (B, output_dim) and h_new.shape == (B, hid_dim) and a.shape == (B, S)

    # bf16-weight MXU path (v6e/v7x perf option) -- f32 accumulation, looser tolerance
    out_b, h_b, a_b = decoder_forward(params, input_ids, hidden, encoder_outputs, mask,
                                      weight_dtype=jnp.bfloat16)
    jax.block_until_ready((out_b, h_b, a_b))
    np.testing.assert_allclose(np.asarray(out_b), np.asarray(ro), rtol=5e-2, atol=5e-2)
    np.testing.assert_allclose(np.asarray(h_b), np.asarray(rh), rtol=5e-2, atol=5e-2)
    np.testing.assert_allclose(np.asarray(a_b), np.asarray(ra), rtol=5e-2, atol=5e-2)

    print("KERNEL_OK")
</pallas_src>

<mosaic_0001>
module attributes {stable_mosaic.version = 11 : i64} {
  func.func @decoder_kernel(%arg0: memref<2x16xf32, #tpu.memory_space<vmem>>, %arg1: memref<2x32xf32, #tpu.memory_space<vmem>>, %arg2: memref<2x8x32xf32, #tpu.memory_space<vmem>>, %arg3: memref<2x8xf32, #tpu.memory_space<vmem>>, %arg4: memref<32x32xf32, #tpu.memory_space<vmem>>, %arg5: memref<32x32xf32, #tpu.memory_space<vmem>>, %arg6: memref<1x32xf32, #tpu.memory_space<vmem>>, %arg7: memref<1x32xf32, #tpu.memory_space<vmem>>, %arg8: memref<48x96xf32, #tpu.memory_space<vmem>>, %arg9: memref<1x96xf32, #tpu.memory_space<vmem>>, %arg10: memref<32x96xf32, #tpu.memory_space<vmem>>, %arg11: memref<1x96xf32, #tpu.memory_space<vmem>>, %arg12: memref<80x128xf32, #tpu.memory_space<vmem>>, %arg13: memref<1x128xf32, #tpu.memory_space<vmem>>, %arg14: memref<2x128xf32, #tpu.memory_space<vmem>>, %arg15: memref<2x32xf32, #tpu.memory_space<vmem>>, %arg16: memref<2x8xf32, #tpu.memory_space<vmem>>) attributes {dimension_semantics = [], scalar_prefetch = 0 : i64, scratch_operands = 0 : i64, tpu.core_type = #tpu.core_type<tc>} {
    %c0 = arith.constant 0 : index
    %c0_0 = arith.constant 0 : index
    %0 = vector.load %arg0[%c0, %c0_0] : memref<2x16xf32, #tpu.memory_space<vmem>>, vector<2x16xf32>
    %c0_1 = arith.constant 0 : index
    %c0_2 = arith.constant 0 : index
    %1 = vector.load %arg1[%c0_1, %c0_2] : memref<2x32xf32, #tpu.memory_space<vmem>>, vector<2x32xf32>
    %c0_3 = arith.constant 0 : index
    %c0_4 = arith.constant 0 : index
    %c0_5 = arith.constant 0 : index
    %2 = vector.load %arg2[%c0_3, %c0_4, %c0_5] : memref<2x8x32xf32, #tpu.memory_space<vmem>>, vector<2x8x32xf32>
    %c0_6 = arith.constant 0 : index
    %c0_7 = arith.constant 0 : index
    %3 = vector.load %arg3[%c0_6, %c0_7] : memref<2x8xf32, #tpu.memory_space<vmem>>, vector<2x8xf32>
    %c0_8 = arith.constant 0 : index
    %c0_9 = arith.constant 0 : index
    %4 = vector.load %arg4[%c0_8, %c0_9] : memref<32x32xf32, #tpu.memory_space<vmem>>, vector<32x32xf32>
    %cst = arith.constant dense<0.000000e+00> : vector<2x32xf32>
    %5 = tpu.matmul %1, %4, %cst {dimension_numbers = #tpu.dot_dimension_numbers<[1], [0], [0], [1], [0, 0, 1, 1], [], []>} : vector<2x32xf32>, vector<32x32xf32>, vector<2x32xf32> -> vector<2x32xf32>
    %c0_10 = arith.constant 0 : index
    %c0_11 = arith.constant 0 : index
    %6 = vector.load %arg6[%c0_10, %c0_11] : memref<1x32xf32, #tpu.memory_space<vmem>>, vector<1x32xf32>
    %7 = vector.broadcast %6 : vector<1x32xf32> to vector<2x32xf32>
    %8 = arith.addf %5, %7 : vector<2x32xf32>
    %9 = vector.shape_cast %2 : vector<2x8x32xf32> to vector<16x32xf32>
    %c0_12 = arith.constant 0 : index
    %c0_13 = arith.constant 0 : index
    %10 = vector.load %arg5[%c0_12, %c0_13] : memref<32x32xf32, #tpu.memory_space<vmem>>, vector<32x32xf32>
    %cst_14 = arith.constant dense<0.000000e+00> : vector<16x32xf32>
    %11 = tpu.matmul %9, %10, %cst_14 {dimension_numbers = #tpu.dot_dimension_numbers<[1], [0], [0], [1], [0, 0, 1, 1], [], []>} : vector<16x32xf32>, vector<32x32xf32>, vector<16x32xf32> -> vector<16x32xf32>
    %12 = vector.shape_cast %11 : vector<16x32xf32> to vector<2x8x32xf32>
    %13 = vector.shape_cast %8 : vector<2x32xf32> to vector<2x1x32xf32>
    %14 = vector.broadcast %13 : vector<2x1x32xf32> to vector<2x8x32xf32>
    %15 = arith.addf %12, %14 : vector<2x8x32xf32>
    %16 = math.tanh %15 : vector<2x8x32xf32>
    %c0_15 = arith.constant 0 : index
    %c0_16 = arith.constant 0 : index
    %17 = vector.load %arg7[%c0_15, %c0_16] : memref<1x32xf32, #tpu.memory_space<vmem>>, vector<1x32xf32>
    %18 = vector.shape_cast %17 : vector<1x32xf32> to vector<1x1x32xf32>
    %19 = vector.broadcast %18 : vector<1x1x32xf32> to vector<2x8x32xf32>
    %20 = arith.mulf %16, %19 : vector<2x8x32xf32>
    %cst_17 = arith.constant dense<0.000000e+00> : vector<2x8xf32>
    %21 = vector.multi_reduction <add>, %20, %cst_17 [2] : vector<2x8x32xf32> to vector<2x8xf32>
    %cst_18 = arith.constant 0.000000e+00 : f32
    %22 = vector.broadcast %cst_18 : f32 to vector<2x8xf32>
    %23 = arith.cmpf ogt, %3, %22 : vector<2x8xf32>
    %cst_19 = arith.constant 0.000000e+00 : f32
    %cst_20 = arith.constant -1.000000e+30 : f32
    %24 = vector.broadcast %cst_19 : f32 to vector<2x8xf32>
    %25 = vector.broadcast %cst_20 : f32 to vector<2x8xf32>
    %26 = arith.select %23, %24, %25 : vector<2x8xi1>, vector<2x8xf32>
    %27 = arith.addf %21, %26 : vector<2x8xf32>
    %cst_21 = arith.constant dense<0xFF800000> : vector<2xf32>
    %28 = vector.multi_reduction <maximumf>, %27, %cst_21 [1] : vector<2x8xf32> to vector<2xf32>
    %29 = vector.shape_cast %28 : vector<2xf32> to vector<2x1xf32>
    %30 = vector.broadcast %29 : vector<2x1xf32> to vector<2x8xf32>
    %31 = arith.subf %27, %30 : vector<2x8xf32>
    %32 = math.exp %31 : vector<2x8xf32>
    %cst_22 = arith.constant dense<0.000000e+00> : vector<2xf32>
    %33 = vector.multi_reduction <add>, %32, %cst_22 [1] : vector<2x8xf32> to vector<2xf32>
    %34 = vector.shape_cast %33 : vector<2xf32> to vector<2x1xf32>
    %35 = tpu.reciprocal %34 {approx = true} : vector<2x1xf32> -> vector<2x1xf32>
    %36 = vector.broadcast %35 : vector<2x1xf32> to vector<2x8xf32>
    %37 = arith.mulf %32, %36 : vector<2x8xf32>
    %c0_23 = arith.constant 0 : index
    %c0_24 = arith.constant 0 : index
    %38 = vector.load %arg16[%c0_23, %c0_24] : memref<2x8xf32, #tpu.memory_space<vmem>>, vector<2x8xf32>
    tpu.vector_store %arg16[%c0_23, %c0_24], %37 {strides = array<i32>} : memref<2x8xf32, #tpu.memory_space<vmem>>, vector<2x8xf32>,
    %39 = vector.shape_cast %37 : vector<2x8xf32> to vector<2x8x1xf32>
    %40 = vector.broadcast %39 : vector<2x8x1xf32> to vector<2x8x32xf32>
    %41 = arith.mulf %40, %2 : vector<2x8x32xf32>
    %cst_25 = arith.constant dense<0.000000e+00> : vector<2x32xf32>
    %42 = vector.multi_reduction <add>, %41, %cst_25 [1] : vector<2x8x32xf32> to vector<2x32xf32>
    %43 = tpu.concatenate %0, %42 in 1 : vector<2x16xf32>, vector<2x32xf32> -> vector<2x48xf32>
    %c0_26 = arith.constant 0 : index
    %c0_27 = arith.constant 0 : index
    %44 = vector.load %arg8[%c0_26, %c0_27] : memref<48x96xf32, #tpu.memory_space<vmem>>, vector<48x96xf32>
    %cst_28 = arith.constant dense<0.000000e+00> : vector<2x96xf32>
    %45 = tpu.matmul %43, %44, %cst_28 {dimension_numbers = #tpu.dot_dimension_numbers<[1], [0], [0], [1], [0, 0, 1, 1], [], []>} : vector<2x48xf32>, vector<48x96xf32>, vector<2x96xf32> -> vector<2x96xf32>
    %c0_29 = arith.constant 0 : index
    %c0_30 = arith.constant 0 : index
    %46 = vector.load %arg9[%c0_29, %c0_30] : memref<1x96xf32, #tpu.memory_space<vmem>>, vector<1x96xf32>
    %47 = vector.broadcast %46 : vector<1x96xf32> to vector<2x96xf32>
    %48 = arith.addf %45, %47 : vector<2x96xf32>
    %c0_31 = arith.constant 0 : index
    %c0_32 = arith.constant 0 : index
    %49 = vector.load %arg10[%c0_31, %c0_32] : memref<32x96xf32, #tpu.memory_space<vmem>>, vector<32x96xf32>
    %cst_33 = arith.constant dense<0.000000e+00> : vector<2x96xf32>
    %50 = tpu.matmul %1, %49, %cst_33 {dimension_numbers = #tpu.dot_dimension_numbers<[1], [0], [0], [1], [0, 0, 1, 1], [], []>} : vector<2x32xf32>, vector<32x96xf32>, vector<2x96xf32> -> vector<2x96xf32>
    %c0_34 = arith.constant 0 : index
    %c0_35 = arith.constant 0 : index
    %51 = vector.load %arg11[%c0_34, %c0_35] : memref<1x96xf32, #tpu.memory_space<vmem>>, vector<1x96xf32>
    %52 = vector.broadcast %51 : vector<1x96xf32> to vector<2x96xf32>
    %53 = arith.addf %50, %52 : vector<2x96xf32>
    %54 = vector.extract_strided_slice %48 {offsets = [0, 0], sizes = [2, 32], strides = [1, 1]} : vector<2x96xf32> to vector<2x32xf32>
    %55 = vector.extract_strided_slice %53 {offsets = [0, 0], sizes = [2, 32], strides = [1, 1]} : vector<2x96xf32> to vector<2x32xf32>
    %56 = arith.addf %54, %55 : vector<2x32xf32>
    %57 = arith.negf %56 : vector<2x32xf32>
    %58 = math.exp %57 : vector<2x32xf32>
    %cst_36 = arith.constant 1.000000e+00 : f32
    %59 = vector.broadcast %cst_36 : f32 to vector<2x32xf32>
    %60 = arith.addf %59, %58 : vector<2x32xf32>
    %61 = arith.divf %59, %60 : vector<2x32xf32>
    %62 = vector.extract_strided_slice %48 {offsets = [0, 32], sizes = [2, 32], strides = [1, 1]} : vector<2x96xf32> to vector<2x32xf32>
    %63 = vector.extract_strided_slice %53 {offsets = [0, 32], sizes = [2, 32], strides = [1, 1]} : vector<2x96xf32> to vector<2x32xf32>
    %64 = arith.addf %62, %63 : vector<2x32xf32>
    %65 = arith.negf %64 : vector<2x32xf32>
    %66 = math.exp %65 : vector<2x32xf32>
    %cst_37 = arith.constant 1.000000e+00 : f32
    %67 = vector.broadcast %cst_37 : f32 to vector<2x32xf32>
    %68 = arith.addf %67, %66 : vector<2x32xf32>
    %69 = arith.divf %67, %68 : vector<2x32xf32>
    %70 = vector.extract_strided_slice %48 {offsets = [0, 64], sizes = [2, 32], strides = [1, 1]} : vector<2x96xf32> to vector<2x32xf32>
    %71 = vector.extract_strided_slice %53 {offsets = [0, 64], sizes = [2, 32], strides = [1, 1]} : vector<2x96xf32> to vector<2x32xf32>
    %72 = arith.mulf %61, %71 : vector<2x32xf32>
    %73 = arith.addf %70, %72 : vector<2x32xf32>
    %74 = math.tanh %73 : vector<2x32xf32>
    %cst_38 = arith.constant 1.000000e+00 : f32
    %75 = vector.broadcast %cst_38 : f32 to vector<2x32xf32>
    %76 = arith.subf %75, %69 : vector<2x32xf32>
    %77 = arith.mulf %76, %74 : vector<2x32xf32>
    %78 = arith.mulf %69, %1 : vector<2x32xf32>
    %79 = arith.addf %77, %78 : vector<2x32xf32>
    %c0_39 = arith.constant 0 : index
    %c0_40 = arith.constant 0 : index
    %80 = vector.load %arg15[%c0_39, %c0_40] : memref<2x32xf32, #tpu.memory_space<vmem>>, vector<2x32xf32>
    tpu.vector_store %arg15[%c0_39, %c0_40], %79 {strides = array<i32>} : memref<2x32xf32, #tpu.memory_space<vmem>>, vector<2x32xf32>,
    %81 = tpu.concatenate %79, %42, %0 in 1 : vector<2x32xf32>, vector<2x32xf32>, vector<2x16xf32> -> vector<2x80xf32>
    %c0_41 = arith.constant 0 : index
    %c0_42 = arith.constant 0 : index
    %82 = vector.load %arg12[%c0_41, %c0_42] : memref<80x128xf32, #tpu.memory_space<vmem>>, vector<80x128xf32>
    %cst_43 = arith.constant dense<0.000000e+00> : vector<2x128xf32>
    %83 = tpu.matmul %81, %82, %cst_43 {dimension_numbers = #tpu.dot_dimension_numbers<[1], [0], [0], [1], [0, 0, 1, 1], [], []>} : vector<2x80xf32>, vector<80x128xf32>, vector<2x128xf32> -> vector<2x128xf32>
    %c0_44 = arith.constant 0 : index
    %c0_45 = arith.constant 0 : index
    %84 = vector.load %arg13[%c0_44, %c0_45] : memref<1x128xf32, #tpu.memory_space<vmem>>, vector<1x128xf32>
    %85 = vector.broadcast %84 : vector<1x128xf32> to vector<2x128xf32>
    %86 = arith.addf %83, %85 : vector<2x128xf32>
    %c0_46 = arith.constant 0 : index
    %c0_47 = arith.constant 0 : index
    %87 = vector.load %arg14[%c0_46, %c0_47] : memref<2x128xf32, #tpu.memory_space<vmem>>, vector<2x128xf32>
    tpu.vector_store %arg14[%c0_46, %c0_47], %86 {strides = array<i32>} : memref<2x128xf32, #tpu.memory_space<vmem>>, vector<2x128xf32>,
    return
  }
}

</mosaic_0001>

<bundles_post_ra>
// kernel: tpu_custom_call.1
= control target key start
LH: loop header
LB: loop body
LE: loop exit
PB: predicated region body
PF: predicated region fallthrough
CT: control target
= control target key end

     0   :  { %s1131_s0 = inlined_call_operand.hbm [shape: f32[2,16], index: 0, kind: input, shape index: {}]   ;;  %s1132_s1 = inlined_call_operand.hbm [shape: f32[2,32], index: 1, kind: input, shape index: {}]   ;;  %s1133_s2 = inlined_call_operand.hbm [shape: f32[2,8,32], index: 2, kind: input, shape index: {}]   ;;  %s1134_s3 = inlined_call_operand.vmem [shape: f32[2,8], index: 3, kind: input, shape index: {}]   ;;  %s1135_s4 = inlined_call_operand.hbm [shape: f32[32,32], index: 4, kind: input, shape index: {}]   ;;  %s1136_s5 = inlined_call_operand.hbm [shape: f32[32,32], index: 5, kind: input, shape index: {}]   ;;  %s1137_s6 = inlined_call_operand.vmem [shape: f32[1,32], index: 6, kind: input, shape index: {}]   ;;  %s1138_s7 = inlined_call_operand.vmem [shape: f32[1,32], index: 7, kind: input, shape index: {}]   ;;  %s1139_s8 = inlined_call_operand.hbm [shape: f32[48,96], index: 8, kind: input, shape index: {}]   ;;  %s1140_s9 = inlined_call_operand.vmem [shape: f32[1,96], index: 9, kind: input, shape index: {}]   ;;  %s1141_s10 = inlined_call_operand.hbm [shape: f32[32,96], index: 10, kind: input, shape index: {}]   ;;  %s1142_s11 = inlined_call_operand.vmem [shape: f32[1,96], index: 11, kind: input, shape index: {}]   ;;  %s1143_s12 = inlined_call_operand.hbm [shape: f32[80,128], index: 12, kind: input, shape index: {}]   ;;  %s1144_s13 = inlined_call_operand.vmem [shape: f32[1,128], index: 13, kind: input, shape index: {}]   ;;  %s1145_s14 = inlined_call_operand.hbm [shape: f32[2,128], index: 14, kind: output, shape index: {0}]   ;;  %s1146_s15 = inlined_call_operand.hbm [shape: f32[2,32], index: 15, kind: output, shape index: {1}]   ;;  %s1147_s16 = inlined_call_operand.hbm [shape: f32[2,8], index: 16, kind: output, shape index: {2}]  }
   0x1   :  { %1148 = sst [smem:[#allocation27_spill]] %s1131_s0 }
   0x2   :  { %22 = vsyncpa [#allocation3], 0 }
   0x3   :  { %23 = vsyncpa [#allocation6], 0 }
   0x4   :  { %24 = vsyncpa [#allocation9], 0 }
   0x5   :  { %25 = vsyncpa [#allocation12], 0 }
   0x6   :  { %26 = vsyncpa [#allocation15], 0 }
   0x7   :  { %27 = vsyncpa [#allocation4], 0  ;;  %s45_s23 = sshll.u32 %s1132_s1, 4  ;;  %s46_s23 = int_to_ptr.hbm [resolvable:$true] %s45_s23 }
   0x8   :  { %28 = vsyncpa [#allocation18], 0  ;;  %s918_s24 = smov [#allocation5]   ;;  %s70_s28 = sshll.u32 %s1135_s4, 4  ;;  %s71_s28 = int_to_ptr.hbm [resolvable:$true] %s70_s28 }
   0x9   :  { %s47_s25 = sshll.u32 %s918_s24, 4  ;;  %s919_s29 = smov [#allocation8]   ;;  %s48_s25 = int_to_ptr.vmem [resolvable:$true] %s47_s25 }
   0xa   :  { %50 = dma.hbm_to_vmem [thread:$0]  %s46_s23, 32, %s48_s25, [#allocation6]  }
   0xb   :  { %s72_s30 = sshll.u32 %s919_s29, 4  ;;  %s100_s18 = sshll.u32 %s1139_s8, 4  ;;  %s73_s30 = int_to_ptr.vmem [resolvable:$true] %s72_s30  ;;  %s101_s18 = int_to_ptr.hbm [resolvable:$true] %s100_s18 }
   0xc   :  { %s920_s1 = smov 128   ;;  %s921_s19 = smov 8  }
   0xd   :  { %78 = dma.hbm_to_vmem [thread:$0]  %s71_s28, 512, %s73_s30, [#allocation9], %s920_s1, %s920_s1, %s921_s19  }
   0xe   :  { %s1149_s22 = sld [smem:[#allocation27_spill]]  ;;  %s922_s4 = smov [#allocation11]  }
   0xf   :  { %s102_s24 = sshll.u32 %s922_s4, 4  ;;  %s923_s8 = smov [#allocation2]   ;;  %s103_s24 = int_to_ptr.vmem [resolvable:$true] %s102_s24 }
  0x10   :  { %108 = dma.hbm_to_vmem [thread:$0]  %s101_s18, 768, %s103_s24, [#allocation12], %s920_s1, %s920_s1, %s921_s19  }
  0x11   :  { %s36_s25 = sshll.u32 %s923_s8, 4  ;;  %s55_s29 = sshll.u32 %s1133_s2, 4  ;;  %s37_s25 = int_to_ptr.vmem [resolvable:$true] %s36_s25  ;;  %s56_s29 = int_to_ptr.hbm [resolvable:$true] %s55_s29 }
  0x12   :  { %s83_s0 = sshll.u32 %s1136_s5, 4  ;;  %s924_s17 = smov [#allocation7]   ;;  %s84_s0 = int_to_ptr.hbm [resolvable:$true] %s83_s0 }
  0x13   :  { %s57_s20 = sshll.u32 %s924_s17, 4  ;;  %s925_s18 = smov [#allocation10]   ;;  %s58_s20 = int_to_ptr.vmem [resolvable:$true] %s57_s20 }
  0x14   :  { %s34_s23 = sshll.u32 %s1149_s22, 4  ;;  %s85_s21 = sshll.u32 %s925_s18, 4  ;;  %s35_s23 = int_to_ptr.hbm [resolvable:$true] %s34_s23  ;;  %s86_s21 = int_to_ptr.vmem [resolvable:$true] %s85_s21 }
  0x15   :  { %39 = dma.hbm_to_vmem [thread:$0]  %s35_s23, 32, %s37_s25, [#allocation3]  }
  0x16   :  { %63 = dma.hbm_to_vmem [thread:$0]  %s56_s29, 256, %s58_s20, [#allocation6], %s920_s1, %s920_s1, %s921_s19  }
  0x17   :  { %s115_s2 = sshll.u32 %s1141_s10, 4  ;;  %s130_s24 = sshll.u32 %s1143_s12, 4  ;;  %s116_s2 = int_to_ptr.hbm [resolvable:$true] %s115_s2  ;;  %s131_s24 = int_to_ptr.hbm [resolvable:$true] %s130_s24 }
  0x18   :  { %91 = dma.hbm_to_vmem [thread:$0]  %s84_s0, 512, %s86_s21, [#allocation9], %s920_s1, %s920_s1, %s921_s19  }
  0x19   :  { %s926_s8 = smov [#allocation13]   ;;  %s927_s26 = smov [#allocation14]  }
  0x1a   :  { %s117_s25 = sshll.u32 %s926_s8, 4  ;;  %s132_s10 = sshll.u32 %s927_s26, 4  ;;  %s118_s25 = int_to_ptr.vmem [resolvable:$true] %s117_s25  ;;  %s133_s10 = int_to_ptr.vmem [resolvable:$true] %s132_s10 }
  0x1b   :  { %123 = dma.hbm_to_vmem [thread:$0]  %s116_s2, 512, %s118_s25, [#allocation12], %s920_s1, %s920_s1, %s921_s19  }
  0x1c   :  { %138 = dma.hbm_to_vmem [thread:$0]  %s131_s24, 1280, %s133_s10, [#allocation15], %s920_s1, %s920_s1, %s921_s19  }
  0x1d   :  { %904 = dma.done.wait [#allocation3], 32  }
  0x1e   :  { %905 = vsyncadd [#allocation3], 4294967264 }
  0x1f   :  { %906 = dma.done.wait [#allocation6], 288  }
  0x20   :  { %907 = vsyncadd [#allocation6], 4294967008 }
  0x21   :  { %908 = dma.done.wait [#allocation9], 1024  }
  0x22   :  { %909 = vsyncadd [#allocation9], 4294966272 }
  0x23   :  { %910 = dma.done.wait [#allocation12], 1280  }
  0x24   :  { %911 = vsyncadd [#allocation12], 4294966016 }
  0x25   :  { %912 = dma.done.wait [#allocation15], 1280  }
  0x26   :  { %913 = vsyncadd [#allocation15], 4294966016  ;;  %v181_v0 = vld [vmem:[#allocation8 + $0x18] sm:$0xff]  ;;  %v180_v1 = vld [vmem:[#allocation8 + $0x10] sm:$0xff]  ;;  %vm186_vm0 = vcmask 261120   ;;  %v269_v11 = vlaneseq  ;;  %v929_v35 = vmov 0  }
  0x27   :  { %202 = vmatpush.msra.mxu3 %v181_v0  ;;  %v213_v2 = vld [vmem:[#allocation10 + $0x18] sm:$0xff]  ;;  %v212_v3 = vld [vmem:[#allocation10 + $0x10] sm:$0xff]  ;;  %v179_v4 = vld [vmem:[#allocation8 + $0x8] sm:$0xff]  ;;  %v928_v14 = vmov -1e+30   ;;  %616 = vset.pattern.permute.xlu2 %v929_v35  ;;  %vm298_vm2 = vcmask 1041409  }
  0x28   :  { %232 = vmatpush.msra.mxu1 %v213_v2  ;;  %v178_v5 = vld [vmem:[#allocation8] sm:$0xff]  ;;  %v211_v6 = vld [vmem:[#allocation10 + $0x8] sm:$0xff]  ;;  %v1066_v9 = vld [vmem:[#allocation7] sm:$0xff]  ;;  %v270_v12 = vshrl.u32 %v269_v11, 7  ;;  %618 = vset.pattern.permute.xlu0 %v929_v35  ;;  %v1087_v43 = vand.u32 127, %v269_v11  ;;  %vm301_vm3 = vcmask 58368  }
  0x29   :  { %203 = vmatpush.msra.mxu3 %v180_v1  ;;  %v1064_v7 = vld [vmem:[#allocation5] sm:$0x3]  ;;  %v210_v8 = vld [vmem:[#allocation10] sm:$0xff]  ;;  %v1072_v10 = vld [vmem:[#allocation7 + $0x8] sm:$0xff]  ;;  %vm376_vm4 = vcmask 130048   ;;  %vm388_vm5 = vcmask 392192  }
  0x2a   :  { %233 = vmatpush.msra.mxu1 %v212_v3  ;;  %615 = vset.pattern.permute.xlu1 %v270_v12  ;;  %v177_v13 = vld [vmem:[%s1134_s3] sm:$0x3]  ;;  %v414_v11 = vld [vmem:[#allocation13 + $0x10] sm:$0xff]  ;;  %vm486_vm10 = vcmask 254976   ;;  %vm496_vm11 = vcmask 523264   ;;  %vm512_vm12 = vcmask 654336  }
  0x2b   :  { %204 = vmatpush.msra.mxu3 %v179_v4  ;;  %vm265_vm1 = vcmp.gt.f32.partialorder %v177_v13, 0.0  ;;  %v619_v19 = vld [vmem:[%s1137_s6] ss:$0 sm:$0xff]  ;;  %v382_v13 = vld [vmem:[#allocation11 + $0x20] sm:$0xff]  ;;  %s930_s6 = smov 16   ;;  %s934_s20 = smov [#allocation17]  }
  0x2c   :  { %234 = vmatpush.msra.mxu1 %v211_v6  ;;  %v266_v15 = vsel %vm265_vm1, 0.0, %v928_v14  ;;  %v620_v28 = vld [vmem:[%s1138_s7] ss:$0 sm:$0xff]  ;;  %s931_s7 = smov 64   ;;  %s553_s18 = sshll.u32 %s934_s20, 4  ;;  %s554_s18 = int_to_ptr.vmem [resolvable:$true] %s553_s18 }
  0x2d   :  { %205 = vmatpush.msra.mxu3 %v178_v5  ;;  %v268_v16 = vperm.slane %v266_v15, 0  ;;  %v275_v17 = vperm.slane %v266_v15, 1  ;;  %v383_v12 = vld [vmem:[#allocation11 + $0x28] sm:$0xff]  ;;  %v413_v15 = vld [vmem:[#allocation13 + $0x8] sm:$0xff]  ;;  %s555_s4 = sshll.u32 %s1146_s15, 4  ;;  %s935_s2 = smov [#allocation19]   ;;  %s556_s4 = int_to_ptr.hbm [resolvable:$true] %s555_s4 }
  0x2e   :  { %589 = vmatmul.msk.f32.vlgmr.msra.gmra.mxu3 %vm186_vm0, %v1064_v7  ;;  %235 = vmatpush.msra.mxu1 %v210_v8  ;;  %v415_v8 = vld [vmem:[#allocation13 + $0x18] sm:$0xff]  ;;  %s564_s5 = sshll.u32 %s935_s2, 4  ;;  %s566_s8 = sshll.u32 %s1147_s16, 4  ;;  %s565_s5 = int_to_ptr.vmem [resolvable:$true] %s564_s5  ;;  %s567_s8 = int_to_ptr.hbm [resolvable:$true] %s566_s8 }
  0x2f   :  { %590 = vmatmul.msk.f32.vlgmr.msra.gmra.mxu1 %vm186_vm0, %v1066_v9  ;;  %432 = vmatpush.msrb.mxu3 %v415_v8  ;;  %v503_v8 = vld [vmem:[#allocation14 + $0x28] sm:$0xff]  ;;  %s936_s10 = smov [#allocation16]   ;;  %s544_s19 = sshll.u32 %s1145_s14, 4  ;;  %s545_s19 = int_to_ptr.hbm [resolvable:$true] %s544_s19 }
  0x30   :  { %402 = vmatpush.msra.mxu2 %v383_v12  ;;  %v501_v12 = vld [vmem:[#allocation14 + $0x18] sm:$0xff]  ;;  %s542_s12 = sshll.u32 %s936_s10, 4  ;;  %s543_s12 = int_to_ptr.vmem [resolvable:$true] %s542_s12 }
  0x31   :  { %433 = vmatpush.msrb.mxu3 %v414_v11  ;;  %v502_v11 = vld [vmem:[#allocation14 + $0x20] sm:$0xff] }
  0x32   :  { %273 = vperm.xlu1 %615, %v268_v16   ;;  %v381_v16 = vld [vmem:[#allocation11 + $0x18] sm:$0xff]  ;;  %403 = vmatpush.msra.mxu2 %v382_v13 }
  0x33   :  { %434 = vmatpush.msrb.mxu3 %v413_v15  ;;  %v499_v13 = vld [vmem:[#allocation14 + $0x8] sm:$0xff] }
  0x34   :  { %404 = vmatpush.msra.mxu2 %v381_v16 }
  0x37   :  { %591 = vmatmul.msk.f32.gmra.mxu1 %vm186_vm0, %v1072_v10 }
  0x3a   :  { %280 = vperm.xlu1 %615, %v275_v17   ;;  %v412_v17 = vld [vmem:[#allocation13] sm:$0xff] }
  0x3b   :  { %435 = vmatpush.msrb.mxu3 %v412_v17 }
  0x3c   :  { %593 = vmatmul.msk.f32.vlgmr.msrb.gmra.mxu3 %vm186_vm0, %v1064_v7 }
  0x42   :  { %617 = vset.pattern.permute.xlu1 %v929_v35 }
  0xa4   :  { %v274_v36 = vpop.permute.xlu1 %273 }
  0xac   :  { %v237_v18 = vpop.f32.mrf.mxu1  ;;  %v281_v39 = vpop.permute.xlu1 %280 }
  0xb1   :  { %v207_v20 = vpop.f32.mrf.mxu3 }
  0xb2   :  { %v208_v21 = vadd.f32 %v619_v19, %v207_v20  ;;  %v379_v20 = vld [vmem:[#allocation11 + $0x8] sm:$0xff] }
  0xb4   :  { %v244_v22 = vrot.slane %v208_v21, 1  ;;  %v245_v23 = vperm.slane %v208_v21, 0  ;;  %v240_v24 = vpop.f32.mrf.mxu1 }
  0xb6   :  { %v249_v25 = vadd.f32 %v245_v23, %v237_v18  ;;  %v246_v26 = vperm.slane %v244_v22, 0  ;;  %v380_v18 = vld [vmem:[#allocation11 + $0x10] sm:$0xff] }
  0xb7   :  { %405 = vmatpush.msra.mxu2 %v380_v18 }
  0xb8   :  { %624 = vtanh.f32 %v249_v25  ;;  %v250_v27 = vadd.f32 %v246_v26, %v240_v24 }
  0xb9   :  { %406 = vmatpush.msra.mxu2 %v379_v20  ;;  %v498_v20 = vld [vmem:[#allocation14] sm:$0xff] }
  0xba   :  { %626 = vtanh.f32 %v250_v27 }
  0xbe   :  { %v625_v29 = vpop.eup %624 }
  0xbf   :  { %v257_v30 = vmul.f32 %v625_v29, %v620_v28 }
  0xc0   :  { %v627_v32 = vpop.eup %626 }
  0xc1   :  { %v259_v31 = vsel %vm186_vm0, %v257_v30, 0.0  ;;  %v258_v33 = vmul.f32 %v627_v32, %v620_v28 }
  0xc2   :  { %260 = vadd.xlane.f32.xlu0 %v259_v31 }
  0xc3   :  { %v262_v34 = vsel %vm186_vm0, %v258_v33, 0.0 }
  0xca   :  { %263 = vadd.xlane.f32.xlu0 %v262_v34 }
 0x135   :  { %v261_v37 = vpop.xlane.xlu0 %260 }
 0x136   :  { %v284_v38 = vadd.f32 %v274_v36, %v261_v37 }
 0x138   :  { %289 = vperm.xlu2 %616, %v284_v38  }
 0x13d   :  { %v264_v40 = vpop.xlane.xlu0 %263 }
 0x13e   :  { %v285_v41 = vadd.f32 %v281_v39, %v264_v40  ;;  %v173_v39 = vld [vmem:[#allocation2] sm:$0x3] }
 0x13f   :  { %v621_v40 = vld [vmem:[%s1142_s11] ss:$0 sm:$0xff]  ;;  %s933_s11 = smov 96  }
 0x140   :  { %292 = vperm.xlu2 %616, %v285_v41  }
 0x192   :  { %v290_v42 = vpop.permute.xlu2 %289 }
 0x193   :  { %v296_v45 = vperm.slane %v290_v42, %v1087_v43 }
 0x19a   :  { %v293_v44 = vpop.permute.xlu2 %292 }
 0x19b   :  { %v297_v46 = vperm.slane %v293_v44, %v1087_v43 }
 0x19d   :  { %v299_v47 = vsel %vm298_vm2, %v297_v46, %v296_v45  ;;  %v622_v45 = vld [vmem:[%s1140_s9] ss:$0 sm:$0xff]  ;;  %s932_s9 = smov 32  }
 0x19e   :  { %v302_v48 = vsel %vm301_vm3, %v299_v47, -inf }
 0x19f   :  { %303 = vmax.xlane.f32.xlu0 %v302_v48 }
 0x212   :  { %v304_v49 = vpop.xlane.xlu0 %303 }
 0x213   :  { %v306_v50 = vperm.slane %v304_v49, 0  ;;  %v307_v51 = vperm.slane %v304_v49, 1 }
 0x215   :  { %v310_v52 = vsub.f32 %v284_v38, %v306_v50  ;;  %v311_v53 = vsub.f32 %v285_v41, %v307_v51  ;;  %v437_v41 = vpop.f32.mrf.mxu3 }
 0x216   :  { %v438_v42 = vadd.f32 %v621_v40, %v437_v41 }
 0x217   :  { %v312_v54 = vmul.f32 1.442695, %v310_v52  ;;  %v314_v55 = vmul.f32 1.442695, %v311_v53 }
 0x219   :  { %628 = vpow2.f32 %v312_v54 }
 0x21a   :  { %630 = vpow2.f32 %v314_v55 }
 0x21f   :  { %v629_v56 = vpop.eup %628 }
 0x220   :  { %v631_v57 = vpop.eup %630  ;;  %319 = vperm.xlu1 %617, %v629_v56  }
 0x221   :  { %322 = vperm.xlu2 %616, %v631_v57  }
 0x27b   :  { %v323_v58 = vpop.permute.xlu2 %322 }
 0x27c   :  { %v325_v60 = vperm.slane %v323_v58, %v1087_v43 }
 0x292   :  { %v320_v59 = vpop.permute.xlu1 %319 }
 0x293   :  { %v324_v61 = vperm.slane %v320_v59, %v1087_v43 }
 0x295   :  { %v326_v62 = vsel %vm298_vm2, %v325_v60, %v324_v61 }
 0x296   :  { %v328_v63 = vsel %vm301_vm3, %v326_v62, 0.0 }
 0x297   :  { %329 = vadd.xlane.f32.xlu0 %v328_v63 }
 0x30a   :  { %v330_v0 = vpop.xlane.xlu0 %329 }
 0x30b   :  { %632 = vrcp.f32 %v330_v0 }
 0x311   :  { %v633_v1 = vpop.eup %632 }
 0x312   :  { %v334_v2 = vperm.slane %v633_v1, 1  ;;  %v333_v3 = vperm.slane %v633_v1, 0 }
 0x314   :  { %v338_v4 = vmul.f32 %v631_v57, %v334_v2  ;;  %v337_v5 = vmul.f32 %v629_v56, %v333_v3  ;;  %v507_v3 = vld [vmem:[#allocation14 + $0x48] sm:$0xff] }
 0x315   :  { %522 = vmatpush.msra.mxu0 %v507_v3 }
 0x316   :  { %345 = vperm.xlu2 %616, %v338_v4   ;;  %342 = vperm.xlu1 %617, %v337_v5   ;;  %v506_v4 = vld [vmem:[#allocation14 + $0x40] sm:$0xff]  ;;  %v505_v5 = vld [vmem:[#allocation14 + $0x38] sm:$0xff] }
 0x317   :  { %523 = vmatpush.msra.mxu0 %v506_v4 }
 0x319   :  { %524 = vmatpush.msra.mxu0 %v505_v5 }
 0x31e   :  { %461 = vrot.lane.b32.xlu1 %v438_v42, %s931_s7 }
 0x370   :  { %v346_v6 = vpop.permute.xlu2 %345 }
 0x371   :  { %v355_v14 = vmul.f32 %v346_v6, %v1072_v10  ;;  %v348_v23 = vperm.slane %v346_v6, %v1087_v43  ;;  %v504_v6 = vld [vmem:[#allocation14 + $0x30] sm:$0xff] }
 0x372   :  { %525 = vmatpush.msra.mxu0 %v504_v6 }
 0x373   :  { %v363_v19 = vsel %vm186_vm0, %v355_v14, 0.0 }
 0x374   :  { %v364_v21 = vrot.slane %v363_v19, 4  ;;  %526 = vmatpush.msra.mxu0 %v503_v8 }
 0x376   :  { %v365_v10 = vadd.f32 %v364_v21, %v363_v19  ;;  %527 = vmatpush.msra.mxu0 %v502_v11 }
 0x378   :  { %v366_v26 = vrot.slane %v365_v10, 2  ;;  %528 = vmatpush.msra.mxu0 %v501_v12 }
 0x37a   :  { %v367_v30 = vadd.f32 %v366_v26, %v365_v10 }
 0x37c   :  { %v368_v34 = vrot.slane %v367_v30, 1 }
 0x37e   :  { %v369_v37 = vadd.f32 %v368_v34, %v367_v30 }
 0x388   :  { %v343_v22 = vpop.permute.xlu1 %342 }
 0x389   :  { %v347_v24 = vperm.slane %v343_v22, %v1087_v43  ;;  %v354_v25 = vmul.f32 %v343_v22, %v1066_v9  ;;  %v378_v9 = vld [vmem:[#allocation11] sm:$0xff] }
 0x38a   :  { %407 = vmatpush.msra.mxu2 %v378_v9 }
 0x38b   :  { %v349_v27 = vsel %vm298_vm2, %v348_v23, %v347_v24  ;;  %v356_v28 = vsel %vm186_vm0, %v354_v25, 0.0  ;;  %v623_v25 = vld [vmem:[%s1144_s13] ss:$0 sm:$0xff] }
 0x38c   :  { %v357_v29 = vrot.slane %v356_v28, 4  ;;  %351 = vst.msk [vmem:[#allocation19] sm:$0x3] %vm301_vm3, %v349_v27 }
 0x38e   :  { %v358_v31 = vadd.f32 %v357_v29, %v356_v28 }
 0x390   :  { %v359_v32 = vrot.slane %v358_v31, 2  ;;  %v462_v59 = vpop.permute.xlu1 %461 }
 0x392   :  { %v360_v33 = vadd.f32 %v359_v32, %v358_v31 }
 0x394   :  { %v361_v35 = vrot.slane %v360_v33, 1 }
 0x396   :  { %v362_v36 = vadd.f32 %v361_v35, %v360_v33 }
 0x398   :  { %v372_v38 = vsel %vm298_vm2, %v369_v37, %v362_v36 }
 0x399   :  { %373 = vrot.lane.b32.xlu0 %v372_v38, %s930_s6 }
 0x3a1   :  { %492 = vrot.lane.b32.xlu0 %v173_v39, %s931_s7 }
 0x40b   :  { %v374_v43 = vpop.permute.xlu0 %373 }
 0x40c   :  { %v377_v44 = vsel %vm376_vm4, %v173_v39, %v374_v43 }
 0x40d   :  { %592 = vmatmul.msk.f32.vlgmr.msra.gmra.mxu2 %vm388_vm5, %v377_v44 }
 0x413   :  { %v493_v21 = vpop.permute.xlu0 %492 }
 0x490   :  { %v409_v46 = vpop.f32.mrf.mxu2 }
 0x491   :  { %v410_v47 = vadd.f32 %v622_v45, %v409_v46 }
 0x493   :  { %v440_v48 = vadd.f32 %v438_v42, %v410_v47 }
 0x495   :  { %v594_v49 = vmul.f32 -1.442695, %v440_v48 }
 0x497   :  { %634 = vpow2.f32 %v594_v49 }
 0x49d   :  { %v635_v50 = vpop.eup %634 }
 0x49e   :  { %v444_v51 = vadd.f32 1.0, %v635_v50 }
 0x4a0   :  { %636 = vrcp.f32 %v444_v51  ;;  %v456_v55 = vand.u32 2147483648, %v444_v51  ;;  %v454_v57 = vand.u32 2147483647, %v444_v51  ;;  %vm450_vm7 = vweird.f32 %v444_v51 }
 0x4a2   :  { %v457_v60 = vor.u32 1.1754944e-38, %v456_v55  ;;  %vm455_vm9 = vcmp.eq.f32.partialorder %v454_v57, 8.507059e+37 }
 0x4a6   :  { %v637_v52 = vpop.eup %636 }
 0x4a7   :  { %v446_v53 = vmul.f32 %v637_v52, %v444_v51  ;;  %vm451_vm6 = vweird.f32 %v637_v52 }
 0x4a8   :  { %vm452_vm8 = vmor %vm450_vm7, %vm451_vm6 }
 0x4a9   :  { %v447_v54 = vsub.f32 1.0, %v446_v53 }
 0x4ab   :  { %v448_v56 = vmul.f32 %v637_v52, %v447_v54 }
 0x4ad   :  { %v449_v58 = vadd.f32 %v637_v52, %v448_v56 }
 0x4af   :  { %v453_v61 = vsel %vm452_vm8, %v637_v52, %v449_v58 }
 0x4b0   :  { %v458_v62 = vsel %vm455_vm9, %v457_v60, %v453_v61 }
 0x4b1   :  { %v464_v63 = vmul.f32 %v462_v59, %v458_v62  ;;  %v471_v15 = vsub.f32 1.0, %v458_v62 }
 0x4b3   :  { %466 = vrot.lane.b32.xlu2 %v464_v63, %s931_s7 }
 0x4bb   :  { %477 = vrot.lane.b32.xlu2 %v1064_v7, %s932_s9  ;;  %v500_v7 = vld [vmem:[#allocation14 + $0x10] sm:$0xff] }
 0x4bc   :  { %529 = vmatpush.msra.mxu0 %v500_v7 }
 0x4be   :  { %530 = vmatpush.msra.mxu0 %v499_v13 }
 0x4c0   :  { %531 = vmatpush.msra.mxu0 %v498_v20 }
 0x4c3   :  { %488 = vrot.lane.b32.xlu2 %v372_v38, %s932_s9 }
 0x50d   :  { %v467_v0 = vpop.permute.xlu2 %466 }
 0x50e   :  { %v469_v1 = vadd.f32 %v467_v0, %v410_v47 }
 0x510   :  { %638 = vtanh.f32 %v469_v1 }
 0x515   :  { %v478_v14 = vpop.permute.xlu2 %477 }
 0x516   :  { %v639_v2 = vpop.eup %638  ;;  %v480_v17 = vmul.f32 %v478_v14, %v458_v62 }
 0x517   :  { %473 = vrot.lane.b32.xlu1 %v639_v2, %s933_s11 }
 0x51d   :  { %v489_v10 = vpop.permute.xlu2 %488 }
 0x589   :  { %v474_v16 = vpop.permute.xlu1 %473 }
 0x58a   :  { %v476_v18 = vmul.f32 %v474_v16, %v471_v15 }
 0x58c   :  { %v481_v19 = vadd.f32 %v480_v17, %v476_v18 }
 0x58e   :  { %483 = vrot.lane.b32.xlu1 %v481_v19, %s933_s11 }
 0x600   :  { %v484_v22 = vpop.permute.xlu1 %483 }
 0x601   :  { %487 = vst.msk [vmem:[#allocation17] sm:$0x3] %vm486_vm10, %v484_v22  ;;  %v495_v23 = vsel %vm186_vm0, %v484_v22, %v489_v10 }
 0x602   :  { %v497_v24 = vsel %vm496_vm11, %v495_v23, %v493_v21  ;;  %558 = dma.vmem_to_hbm [thread:$0]  %s554_s18, 32, %s556_s4, [#allocation18]  }
 0x603   :  { %595 = vmatmul.msk.f32.vlgmr.msra.gmra.mxu0 %vm512_vm12, %v497_v24  ;;  %569 = dma.vmem_to_hbm [thread:$0]  %s565_s5, 32, %s567_s8, [#allocation18]  }
 0x680   :  { %v533_v26 = vpop.f32.mrf.mxu0 }
 0x681   :  { %v534_v27 = vadd.f32 %v623_v25, %v533_v26 }
 0x683   :  { %536 = vst [vmem:[#allocation16] sm:$0x3] %v534_v27 }
 0x684   :  { %547 = dma.vmem_to_hbm [thread:$0]  %s543_s12, 32, %s545_s19, [#allocation4]  }
 0x685   :  { %914 = dma.done.wait [#allocation4], 32  }
 0x686   :  { %915 = vsyncadd [#allocation4], 4294967264 }
 0x687   :  { %916 = dma.done.wait [#allocation18], 64  }
 0x688   :  { %917 = vsyncadd [#allocation18], 4294967232 }
 0x689   :  { %582 = vsyncpa [#allocation3], 1 }
 0x68a   :  { %583 = vsyncpa [#allocation6], 1 }
 0x68b   :  { %584 = vsyncpa [#allocation9], 1 }
 0x68c   :  { %585 = vsyncpa [#allocation12], 1 }
 0x68d   :  { %586 = vsyncpa [#allocation15], 1 }
 0x68e   :  { %587 = vsyncpa [#allocation4], 1 }
 0x68f   :  { %588 = vsyncpa [#allocation18], 1 }

</bundles_post_ra>
